<compile_context>
chip_gen: v6e
topology: v6e:2x2x1
jax: 0.10.0
libtpu: 0.0.40
codegen_flags: <defaults>
</compile_context>

<pallas_src>
import math
import functools

import jax
import jax.numpy as jnp
from jax import lax
from jax.experimental import pallas as pl
from jax.experimental.pallas import tpu as pltpu


# MXU operand dtype (bf16 feeds the MXU at full rate on v5e/v6e/v7x).  Accumulation,
# softmax and LayerNorm statistics are always float32.
MXU_INPUT_DTYPE = jnp.bfloat16
LN_EPS = 1e-5
NEG_INF = -1e30
VMEM_LIMIT = 64 * 1024 * 1024   # raise the default scoped-VMEM limit (16 MiB v5e / 32 MiB v6e,v7x)


# ------------------------------ tiling helpers ------------------------------

def _row_tile(n, target):
    """Row tile for row-parallel (N, ...) kernels: full N if small, otherwise a
    multiple of 8 <= target (prefer exact divisors of n; a ragged tail is handled
    by a cdiv grid with masked boundary stores)."""
    if n <= target:
        return n
    best = None
    t = 8
    while t <= target:
        if n % t == 0:
            best = t
        t += 8
    return best if best is not None else target


def _seq_tile(t, target):
    """Sequence tile for attention.  Must divide T exactly (ragged KV blocks would
    corrupt the softmax), multiple of 8; falls back to the full sequence."""
    if t <= target:
        return t
    best = t
    c = 8
    while c <= target:
        if t % c == 0:
            best = c
        c += 8
    return best


# ----------------------------- QKV projection -------------------------------

def _qkv_kernel(x_ref, w_ref, b_ref, o_ref):
    x = x_ref[...].astype(MXU_INPUT_DTYPE)
    y = jnp.dot(x, w_ref[...], preferred_element_type=jnp.float32) + b_ref[...]
    o_ref[...] = y.astype(o_ref.dtype)


def qkv_proj(x, w_t, b_row):
    """(N, C) @ (C, 3C) + b, softmax scale pre-folded into the Q columns; bf16 output."""
    N, C = x.shape
    D3 = w_t.shape[1]
    tn = _row_tile(N, 512)
    return pl.pallas_call(
        _qkv_kernel,
        out_shape=jax.ShapeDtypeStruct((N, D3), MXU_INPUT_DTYPE),
        grid=(pl.cdiv(N, tn),),
        in_specs=[pl.BlockSpec((tn, C), lambda i: (i, 0)),
                  pl.BlockSpec((C, D3), lambda i: (0, 0)),      # weights stay resident
                  pl.BlockSpec((1, D3), lambda i: (0, 0))],
        out_specs=pl.BlockSpec((tn, D3), lambda i: (i, 0)),
        compiler_params=pltpu.CompilerParams(
            dimension_semantics=("parallel",), vmem_limit_bytes=VMEM_LIMIT),
    )(x, w_t, b_row)


# --------------------- flash attention (online softmax) ---------------------

def _flash_attn_kernel(q_ref, k_ref, v_ref, m_ref, o_ref, m_sc, l_sc, acc_sc,
                       *, num_heads, head_dim):
    H, Dh = num_heads, head_dim
    ki = pl.program_id(2)

    @pl.when(ki == 0)
    def _():
        m_sc[...] = jnp.full_like(m_sc, -jnp.inf)
        l_sc[...] = jnp.zeros_like(l_sc)
        acc_sc[...] = jnp.zeros_like(acc_sc)

    addm = m_ref[0]                                    # (1, tk) additive key-padding mask, f32
    # TODO(synk): for Dh < 128, process heads in 128-lane groups (or pre-permute the QKV
    # weight columns in prepare_params) to avoid XLU relayout of unaligned per-head slices.
    for h in range(H):
        sl = slice(h * Dh, (h + 1) * Dh)
        q = q_ref[0, :, sl]                            # (tq, Dh)  (scale folded into W_q)
        k = k_ref[0, :, sl]                            # (tk, Dh)
        v = v_ref[0, :, sl]                            # (tk, Dh)
        # q @ k^T without an explicit transpose: contract the last dims on the MXU.
        s = lax.dot_general(q, k, dimension_numbers=(((1,), (1,)), ((), ())),
                            preferred_element_type=jnp.float32)           # (tq, tk) f32
        s = s + addm
        m_prev = m_sc[h]                               # (tq, 1)
        m_new = jnp.maximum(m_prev, jnp.max(s, axis=-1, keepdims=True))
        alpha = jnp.exp(m_prev - m_new)
        p = jnp.exp(s - m_new)
        l_sc[h] = alpha * l_sc[h] + jnp.sum(p, axis=-1, keepdims=True)
        acc_sc[h] = alpha * acc_sc[h] + jnp.dot(p.astype(v.dtype), v,
                                                preferred_element_type=jnp.float32)
        m_sc[h] = m_new

    @pl.when(ki == pl.num_programs(2) - 1)
    def _():
        for h in range(H):
            inv = pl.reciprocal(l_sc[h], approx=True)              # EUP slot
            o_ref[0, :, h * Dh:(h + 1) * Dh] = (acc_sc[h] * inv).astype(o_ref.dtype)


def flash_attention(qkv_b, addm, num_heads, head_dim):
    """qkv_b: (B, T, 3C) bf16 (Q|K|V concatenated), addm: (B, 1, T) f32 additive mask."""
    B, T, D3 = qkv_b.shape
    C = num_heads * head_dim
    tq = _seq_tile(T, 256)
    tk = _seq_tile(T, 512)
    kernel = functools.partial(_flash_attn_kernel, num_heads=num_heads, head_dim=head_dim)
    return pl.pallas_call(
        kernel,
        out_shape=jax.ShapeDtypeStruct((B, T, C), MXU_INPUT_DTYPE),
        grid=(B, T // tq, T // tk),
        # Same HBM array passed three times; block index 0/1/2 along the 3C axis selects
        # the Q / K / V slab with zero XLA slicing.
        in_specs=[pl.BlockSpec((1, tq, C), lambda b, qi, ki: (b, qi, 0)),   # Q
                  pl.BlockSpec((1, tk, C), lambda b, qi, ki: (b, ki, 1)),   # K
                  pl.BlockSpec((1, tk, C), lambda b, qi, ki: (b, ki, 2)),   # V
                  pl.BlockSpec((1, 1, tk), lambda b, qi, ki: (b, 0, ki))],  # mask
        out_specs=pl.BlockSpec((1, tq, C), lambda b, qi, ki: (b, qi, 0)),
        scratch_shapes=[pltpu.VMEM((num_heads, tq, 1), jnp.float32),        # running max
                        pltpu.VMEM((num_heads, tq, 1), jnp.float32),        # running sum
                        pltpu.VMEM((num_heads, tq, head_dim), jnp.float32)],  # accumulator
        compiler_params=pltpu.CompilerParams(
            dimension_semantics=("parallel", "parallel", "arbitrary"),
            vmem_limit_bytes=VMEM_LIMIT),
    )(qkv_b, qkv_b, qkv_b, addm)


# ----- fused out-projection + residual + LN0 + FFN + residual + LN1 ---------

def _outproj_ffn_kernel(a_ref, r_ref, ow_ref, ob_ref, g0_ref, bb0_ref,
                        w1_ref, b1_ref, w2_ref, b2_ref, g1_ref, bb1_ref, o_ref):
    def layer_norm(y, g, b):
        mu = jnp.mean(y, axis=-1, keepdims=True)
        var = jnp.mean(jnp.square(y - mu), axis=-1, keepdims=True)
        return (y - mu) * lax.rsqrt(var + LN_EPS) * g + b

    a = a_ref[...].astype(MXU_INPUT_DTYPE)
    # out-projection + dropout(identity) + residual + LayerNorm0
    y = (jnp.dot(a, ow_ref[...], preferred_element_type=jnp.float32)
         + ob_ref[...] + r_ref[...])
    x1 = layer_norm(y, g0_ref[...], bb0_ref[...])
    # FFN: fc1 -> relu -> fc2, + residual + LayerNorm1 (x1 never leaves VMEM)
    h = (jnp.dot(x1.astype(MXU_INPUT_DTYPE), w1_ref[...],
                 preferred_element_type=jnp.float32) + b1_ref[...])
    h = jnp.maximum(h, 0.0)
    y2 = (jnp.dot(h.astype(MXU_INPUT_DTYPE), w2_ref[...],
                  preferred_element_type=jnp.float32) + b2_ref[...] + x1)
    o_ref[...] = layer_norm(y2, g1_ref[...], bb1_ref[...]).astype(o_ref.dtype)


def outproj_ffn(attn, residual, prep):
    N, C = attn.shape
    F = prep["fc1_w_t"].shape[1]
    # Smaller row tile: the (tn, F) f32 hidden activation lives in VMEM per step.
    tn = _row_tile(N, 256)
    return pl.pallas_call(
        _outproj_ffn_kernel,
        out_shape=jax.ShapeDtypeStruct((N, C), jnp.float32),
        grid=(pl.cdiv(N, tn),),
        in_specs=[pl.BlockSpec((tn, C), lambda i: (i, 0)),     # attention output (bf16)
                  pl.BlockSpec((tn, C), lambda i: (i, 0)),     # residual = pre-attn x (f32)
                  pl.BlockSpec((C, C), lambda i: (0, 0)),      # out_w  (resident, bf16)
                  pl.BlockSpec((1, C), lambda i: (0, 0)),
                  pl.BlockSpec((1, C), lambda i: (0, 0)),
                  pl.BlockSpec((1, C), lambda i: (0, 0)),
                  pl.BlockSpec((C, F), lambda i: (0, 0)),      # fc1_w (resident, bf16)
                  pl.BlockSpec((1, F), lambda i: (0, 0)),
                  pl.BlockSpec((F, C), lambda i: (0, 0)),      # fc2_w (resident, bf16)
                  pl.BlockSpec((1, C), lambda i: (0, 0)),
                  pl.BlockSpec((1, C), lambda i: (0, 0)),
                  pl.BlockSpec((1, C), lambda i: (0, 0))],
        out_specs=pl.BlockSpec((tn, C), lambda i: (i, 0)),
        compiler_params=pltpu.CompilerParams(
            dimension_semantics=("parallel",), vmem_limit_bytes=VMEM_LIMIT),
    )(attn, residual, prep["out_w_t"], prep["out_b"], prep["ln0_g"], prep["ln0_b"],
      prep["fc1_w_t"], prep["fc1_b"], prep["fc2_w_t"], prep["fc2_b"],
      prep["ln1_g"], prep["ln1_b"])


# --------------------------- layer forward (glue) ---------------------------

def prepare_params(p, num_heads):
    """One-time weight prep: transpose to (Din, Dout), fold softmax scale into the Q
    projection, cast the matmul weights to the MXU operand dtype (bf16)."""
    C = p["ln0_g"].shape[0]
    Dh = C // num_heads
    scale = Dh ** -0.5
    wdt = MXU_INPUT_DTYPE
    in_w_t = jnp.asarray(p["in_w"], jnp.float32).T                 # (C, 3C)
    in_w_t = in_w_t.at[:, :C].multiply(scale)                      # fold scale into Q cols
    in_b = jnp.asarray(p["in_b"], jnp.float32).at[:C].multiply(scale)
    return {
        "in_w_t": in_w_t.astype(wdt), "in_b": in_b[None, :],
        "out_w_t": p["out_w"].T.astype(wdt), "out_b": p["out_b"][None, :],
        "fc1_w_t": p["fc1_w"].T.astype(wdt), "fc1_b": p["fc1_b"][None, :],
        "fc2_w_t": p["fc2_w"].T.astype(wdt), "fc2_b": p["fc2_b"][None, :],
        "ln0_g": p["ln0_g"][None, :], "ln0_b": p["ln0_b"][None, :],
        "ln1_g": p["ln1_g"][None, :], "ln1_b": p["ln1_b"][None, :],
    }


def transformer_encoder_layer(x, pad_mask, prep, num_heads):
    """x: (T, B, C) f32, pad_mask: (B, T) bool (True = padding). Post-norm, eval mode."""
    T, B, C = x.shape
    H = num_heads
    Dh = C // H
    N = B * T

    # Run the whole layer in (B, T, C) row order: one transpose in, one out.
    xf = jnp.transpose(x, (1, 0, 2)).reshape(N, C)

    # --- self-attention ---
    qkv = qkv_proj(xf, prep["in_w_t"], prep["in_b"])               # (N, 3C) bf16
    qkv_b = qkv.reshape(B, T, 3 * C)                               # free reshape

    addm = jnp.where(pad_mask, NEG_INF, 0.0).astype(jnp.float32)[:, None, :]   # (B, 1, T)
    attn_b = flash_attention(qkv_b, addm, H, Dh)                   # (B, T, C) bf16
    attn_f = attn_b.reshape(N, C)                                  # free reshape

    # out-proj + dropout(id) + residual + LN0 + FFN + dropout(id) + residual + LN1 (fused)
    out = outproj_ffn(attn_f, xf, prep)                            # (N, C) f32

    return jnp.transpose(out.reshape(B, T, C), (1, 0, 2))          # back to (T, B, C)


# ------------------------------- reference ----------------------------------

def reference(x, pad_mask, p, num_heads):
    T, B, C = x.shape
    H = num_heads
    Dh = C // H
    scale = Dh ** -0.5

    def lin(t, w, b):
        return t @ w.T + b

    def ln(y, g, b):
        mu = y.mean(-1, keepdims=True)
        var = ((y - mu) ** 2).mean(-1, keepdims=True)
        return (y - mu) / jnp.sqrt(var + LN_EPS) * g + b

    xf = x.reshape(T * B, C)
    residual = xf
    qkv = lin(xf, p["in_w"], p["in_b"])
    q, k, v = jnp.split(qkv, 3, axis=-1)

    def to_heads(t):
        return t.reshape(T, B, H, Dh).transpose(1, 2, 0, 3).reshape(B * H, T, Dh)

    qh, kh, vh = map(to_heads, (q, k, v))
    s = jnp.einsum("btd,bsd->bts", qh * scale, kh)
    addm = jnp.where(pad_mask, NEG_INF, 0.0).astype(jnp.float32)
    s = s + jnp.broadcast_to(addm[:, None, None, :], (B, H, 1, T)).reshape(B * H, 1, T)
    pr = jax.nn.softmax(s, axis=-1)
    ah = jnp.einsum("bts,bsd->btd", pr, vh)
    a = ah.reshape(B, H, T, Dh).transpose(2, 0, 1, 3).reshape(T * B, C)
    a = lin(a, p["out_w"], p["out_b"])
    x1 = ln(residual + a, p["ln0_g"], p["ln0_b"])
    f = lin(jax.nn.relu(lin(x1, p["fc1_w"], p["fc1_b"])), p["fc2_w"], p["fc2_b"])
    x2 = ln(x1 + f, p["ln1_g"], p["ln1_b"])
    return x2.reshape(T, B, C)


# --------------------------------- main --------------------------------------

def make_params(key, C, F):
    def xavier(k, shape):
        fan_out, fan_in = shape
        lim = math.sqrt(6.0 / (fan_in + fan_out))
        return jax.random.uniform(k, shape, jnp.float32, -lim, lim)

    ks = jax.random.split(key, 4)
    return {
        "in_w": xavier(ks[0], (3 * C, C)),
        "in_b": jnp.zeros((3 * C,), jnp.float32),
        "out_w": xavier(ks[1], (C, C)),
        "out_b": jnp.zeros((C,), jnp.float32),
        "fc1_w": xavier(ks[2], (F, C)),
        "fc1_b": jnp.zeros((F,), jnp.float32),
        "fc2_w": xavier(ks[3], (C, F)),
        "fc2_b": jnp.zeros((C,), jnp.float32),
        "ln0_g": jnp.ones((C,), jnp.float32),
        "ln0_b": jnp.zeros((C,), jnp.float32),
        "ln1_g": jnp.ones((C,), jnp.float32),
        "ln1_b": jnp.zeros((C,), jnp.float32),
    }


if __name__ == "__main__":
    T, B, C, H, F = 8, 2, 32, 4, 64

    key = jax.random.PRNGKey(0)
    kx, kp = jax.random.split(key)
    x = jax.random.normal(kx, (T, B, C), jnp.float32)
    # batch 0: no padding; batch 1: last two positions are padding.
    pad_mask = jnp.zeros((B, T), jnp.bool_).at[1, -2:].set(True)
    params = make_params(kp, C, F)
    prep = prepare_params(params, H)

    out = transformer_encoder_layer(x, pad_mask, prep, H)
    out = jax.block_until_ready(out)

    ref = jax.block_until_ready(reference(x, pad_mask, params, H))
    assert out.shape == (T, B, C)
    max_diff = jnp.max(jnp.abs(out - ref))
    # bf16 MXU operands / bf16 intermediates -> slightly looser tolerance than pure f32.
    assert jnp.allclose(out, ref, atol=3e-2, rtol=3e-2), f"max abs diff {max_diff}"

    print("KERNEL_OK")
</pallas_src>

<mosaic_0001>
module attributes {stable_mosaic.version = 11 : i64} {
  func.func @_qkv_kernel(%arg0: i32, %arg1: memref<16x32xf32, #tpu.memory_space<vmem>>, %arg2: memref<32x96xbf16, #tpu.memory_space<vmem>>, %arg3: memref<1x96xf32, #tpu.memory_space<vmem>>, %arg4: memref<16x96xbf16, #tpu.memory_space<vmem>>) attributes {dimension_semantics = [#tpu.dimension_semantics<parallel>], iteration_bounds = array<i64: 1>, scalar_prefetch = 0 : i64, scratch_operands = 0 : i64, tpu.core_type = #tpu.core_type<tc>, window_params = [{transform_indices = @transform_0, window_bounds = array<i64: 16, 32>}, {pipeline_mode = #tpu.pipeline_mode<synchronous>, transform_indices = @transform_1, window_bounds = array<i64: 32, 96>}, {pipeline_mode = #tpu.pipeline_mode<synchronous>, transform_indices = @transform_2, window_bounds = array<i64: 1, 96>}, {transform_indices = @transform_3, window_bounds = array<i64: 16, 96>}]} {
    %c0 = arith.constant 0 : index
    %c0_0 = arith.constant 0 : index
    %0 = vector.load %arg1[%c0, %c0_0] : memref<16x32xf32, #tpu.memory_space<vmem>>, vector<16x32xf32>
    %1 = arith.truncf %0 : vector<16x32xf32> to vector<16x32xbf16>
    %c0_1 = arith.constant 0 : index
    %c0_2 = arith.constant 0 : index
    %2 = vector.load %arg2[%c0_1, %c0_2] : memref<32x96xbf16, #tpu.memory_space<vmem>>, vector<32x96xbf16>
    %cst = arith.constant dense<0.000000e+00> : vector<16x96xf32>
    %3 = tpu.matmul %1, %2, %cst {dimension_numbers = #tpu.dot_dimension_numbers<[1], [0], [0], [1], [0, 0, 1, 1], [], []>} : vector<16x32xbf16>, vector<32x96xbf16>, vector<16x96xf32> -> vector<16x96xf32>
    %c0_3 = arith.constant 0 : index
    %c0_4 = arith.constant 0 : index
    %4 = vector.load %arg3[%c0_3, %c0_4] : memref<1x96xf32, #tpu.memory_space<vmem>>, vector<1x96xf32>
    %5 = vector.broadcast %4 : vector<1x96xf32> to vector<16x96xf32>
    %6 = arith.addf %3, %5 : vector<16x96xf32>
    %7 = arith.truncf %6 : vector<16x96xf32> to vector<16x96xbf16>
    %c0_5 = arith.constant 0 : index
    %c0_6 = arith.constant 0 : index
    %8 = vector.load %arg4[%c0_5, %c0_6] : memref<16x96xbf16, #tpu.memory_space<vmem>>, vector<16x96xbf16>
    tpu.vector_store %arg4[%c0_5, %c0_6], %7 {strides = array<i32>} : memref<16x96xbf16, #tpu.memory_space<vmem>>, vector<16x96xbf16>,
    return
  }
  func.func @transform_0(%arg0: i32) -> (i32, i32) {
    %c0_i32 = arith.constant 0 : i32
    %c0_i32_0 = arith.constant 0 : i32
    return %arg0, %c0_i32 : i32, i32
  }
  func.func @transform_1(%arg0: i32) -> (i32, i32) {
    %c0_i32 = arith.constant 0 : i32
    %c0_i32_0 = arith.constant 0 : i32
    %c0_i32_1 = arith.constant 0 : i32
    return %c0_i32, %c0_i32_0 : i32, i32
  }
  func.func @transform_2(%arg0: i32) -> (i32, i32) {
    %c0_i32 = arith.constant 0 : i32
    %c0_i32_0 = arith.constant 0 : i32
    %c0_i32_1 = arith.constant 0 : i32
    return %c0_i32, %c0_i32_0 : i32, i32
  }
  func.func @transform_3(%arg0: i32) -> (i32, i32) {
    %c0_i32 = arith.constant 0 : i32
    %c0_i32_0 = arith.constant 0 : i32
    return %arg0, %c0_i32 : i32, i32
  }
}

</mosaic_0001>

<bundles_post_ra>
// kernel: tpu_custom_call.1
= control target key start
LH: loop header
LB: loop body
LE: loop exit
PB: predicated region body
PF: predicated region fallthrough
CT: control target
= control target key end

     0   :  { %8 = vsyncpa [#allocation3], 0  ;;  %s287_s0 = inlined_call_operand.hbm [shape: f32[16,32], index: 0, kind: input, shape index: {}]   ;;  %s288_s1 = inlined_call_operand.hbm [shape: bf16[32,96], index: 1, kind: input, shape index: {}]   ;;  %s289_s2 = inlined_call_operand.vmem [shape: f32[1,96], index: 2, kind: input, shape index: {}]   ;;  %s290_s3 = inlined_call_operand.hbm [shape: bf16[16,96], index: 3, kind: output, shape index: {}]  }
   0x1   :  { %9 = vsyncpa [#allocation6], 0 }
   0x2   :  { %10 = vsyncpa [#allocation4], 0  ;;  %s240_s12 = smov [#allocation2]  }
   0x3   :  { %s16_s13 = sshll.u32 %s240_s12, 4  ;;  %s17_s13 = int_to_ptr.vmem [resolvable:$true] %s16_s13 }
   0x4   :  { %s182_s14 = scalar_lea.vmem %s17_s13, 256  ;;  %p187_p1 = scmp.lt.s32.totalorder %s17_s13, %s17_s13 }
   0x5   :  { %p183_p0 = scmp.ne.s32.totalorder %s17_s13, %s182_s14  ;;  %p188_p2 = scmp.lt.s32.totalorder %s182_s14, %s182_s14 }
   0x7   :  { %p189_p3 = por %p188_p2, %p187_p1 }
   0x9   :  { %p190_p4 = pnand %p189_p3, %p183_p0 }
   0xb   :  { %193 = shalt.err (!%p190_p4)
}
   0xc   :  { %s241_s15 = smov 128   ;;  %s242_s16 = smov 8  }
   0xd   :  { %22 = dma.hbm_to_vmem [thread:$0]  %s287_s0, 256, %s17_s13, [#allocation3], %s241_s15, %s241_s15, %s242_s16  }
   0xe   :  { %s243_s19 = smov [#allocation5]  }
   0xf   :  { %s28_s20 = sshll.u32 %s243_s19, 4  ;;  %s29_s20 = int_to_ptr.vmem [resolvable:$true] %s28_s20 }
  0x10   :  { %s202_s21 = scalar_lea.vmem %s29_s20, 256  ;;  %p207_p6 = scmp.lt.s32.totalorder %s29_s20, %s29_s20 }
  0x11   :  { %p203_p5 = scmp.ne.s32.totalorder %s29_s20, %s202_s21  ;;  %p208_p7 = scmp.lt.s32.totalorder %s202_s21, %s202_s21 }
  0x13   :  { %p209_p8 = por %p208_p7, %p207_p6 }
  0x15   :  { %p210_p9 = pnand %p209_p8, %p203_p5 }
  0x17   :  { %213 = shalt.err (!%p210_p9)
}
  0x18   :  { %s244_s22 = smov 64   ;;  %s245_s23 = smov 4  }
  0x19   :  { %34 = dma.hbm_to_vmem [thread:$0]  %s288_s1, 256, %s29_s20, [#allocation6], %s244_s22, %s244_s22, %s245_s23  }
  0x1a   :  { %234 = dma.done.wait [#allocation3], 256  }
  0x1b   :  { %235 = vsyncadd [#allocation3], 4294967040 }
  0x1c   :  { %236 = dma.done.wait [#allocation6], 256  }
  0x1d   :  { %237 = vsyncadd [#allocation6], 4294967040  ;;  %v246_v0 = vmov 0.0   ;;  %vm247_vm0 = vmmov 0   ;;  %v172_v1 = vld [vmem:[#allocation5 + $0x8] sm:$0xff]   ;;  %v173_v2 = vld [vmem:[#allocation5] sm:$0xff]  }
  0x1e   :  { %155 = vmatprep.subr.bf16.mxu0 %v246_v0  ;;  %159 = vmatprep.mubr.msk.bf16.mxu0 %vm247_vm0, %v246_v0  ;;  %v44_v3 = vld [vmem:[#allocation2] sm:$0xff]  ;;  %v45_v4 = vld [vmem:[#allocation2 + $0x8] sm:$0xff]  ;;  %vm70_vm1 = vcmask 261120   ;;  %vm123_vm2 = vcmask 781312   ;;  %s248_s26 = smov [#allocation7]  }
  0x1f   :  { %156 = vmatpush3.bf16.msra.mxu0 %v172_v1  ;;  %v46_v5 = vpack.c.bf16 %v45_v4, %v44_v3  ;;  %v144_v6 = vld [vmem:[%s289_s2] ss:$0 sm:$0xff]  ;;  %s131_s27 = sshll.u32 %s248_s26, 4  ;;  %s132_s27 = int_to_ptr.vmem [resolvable:$true] %s131_s27 }
  0x20   :  { %157 = vmatprep.subr.bf16.mxu0 %v246_v0  ;;  %s214_s28 = scalar_lea.vmem %s132_s27, 128  ;;  %p219_p11 = scmp.lt.s32.totalorder %s132_s27, %s132_s27 }
  0x21   :  { %p215_p10 = scmp.ne.s32.totalorder %s132_s27, %s214_s28  ;;  %p220_p12 = scmp.lt.s32.totalorder %s214_s28, %s214_s28 }
  0x23   :  { %158 = vmatpush3.bf16.msra.mxu0 %v173_v2  ;;  %p221_p13 = por %p220_p12, %p219_p11 }
  0x25   :  { %p222_p0 = pnand %p221_p13, %p215_p10 }
  0x26   :  { %160 = vmatmul.mubr.msk.bf16.vlgmr.msra.gmra.mxu0 %vm70_vm1, %v46_v5 }
  0xe6   :  { %v108_v7 = vpop.f32.mrf.mxu0 }
  0xe7   :  { %v109_v8 = vadd.f32 %v144_v6, %v108_v7 }
  0xe8   :  { %v161_v9 = vpop.f32.mrf.mxu0 }
  0xe9   :  { %v150_v10 = vpack.c.bf16 %v109_v8, %v109_v8 }
  0xea   :  { %v111_v11 = vpop.f32.mrf.mxu0 }
  0xeb   :  { %v112_v12 = vadd.f32 %v144_v6, %v111_v11  ;;  %124 = vst.msk [vmem:[#allocation7] sm:$0xf] %vm123_vm2, %v150_v10 }
  0xec   :  { %v162_v13 = vpop.f32.mrf.mxu0 }
  0xed   :  { %v151_v14 = vpack.c.bf16 %v112_v12, %v112_v12 }
  0xef   :  { %125 = vst.msk [vmem:[#allocation7 + $0x4] sm:$0xf] %vm123_vm2, %v151_v14 }
  0xf0   :  { %225 = shalt.err (!%p222_p0)
}
  0xf1   :  { %137 = dma.vmem_to_hbm [thread:$0]  %s132_s27, 128, %s290_s3, [#allocation4], %s244_s22, %s244_s22, %s245_s23  }
  0xf2   :  { %238 = dma.done.wait [#allocation4], 128  }
  0xf3   :  { %239 = vsyncadd [#allocation4], 4294967168 }
  0xf4   :  { %141 = vsyncpa [#allocation3], 1 }
  0xf5   :  { %142 = vsyncpa [#allocation6], 1 }
  0xf6   :  { %143 = vsyncpa [#allocation4], 1 }

</bundles_post_ra>
